<compile_context>
chip_gen: v7x
topology: tpu7x:2x2x1
jax: 0.10.0
libtpu: 0.0.40
codegen_flags: <defaults>
</compile_context>

<pallas_src>
import jax
import jax.numpy as jnp
from jax.experimental import pallas as pl
from jax.experimental.pallas import tpu as pltpu


def _round_up(x, m):
    return ((x + m - 1) // m) * m


# ----------------------------------------------------------------------------
# Fused CLS-head kernel.
# ----------------------------------------------------------------------------
def cls_head_kernel(x_ref, cw_ref, cb_ref, w1_ref, b1_ref, w2_ref, b2_ref,
                    w3_ref, b3_ref, o_ref, acc_ref):
    k = pl.program_id(1)

    @pl.when(k == 0)
    def _():
        acc_ref[...] = jnp.zeros_like(acc_ref)

    # Conv2d(1, 1, (1, D)): per-(b, s) dot over D + scalar bias, then ReLU.
    x = x_ref[...]                                           # (tB, tS, D) f32
    h = jnp.sum(x * cw_ref[...], axis=-1) + cb_ref[0]        # (tB, tS)
    h = jnp.maximum(h, 0.0)                                  # ReLU

    # fc1 partial product (bias added once, in the epilogue).  bf16 MXU, f32 acc.
    acc_ref[...] += jnp.dot(h.astype(w1_ref.dtype), w1_ref[...],
                            preferred_element_type=jnp.float32)

    @pl.when(k == pl.num_programs(1) - 1)
    def _():
        z1 = jnp.maximum(acc_ref[...] + b1_ref[...], 0.0)    # fc1 bias + ReLU
        # dropout1: eval-mode identity.
        z2 = jnp.dot(z1.astype(w2_ref.dtype), w2_ref[...],
                     preferred_element_type=jnp.float32) + b2_ref[...]
        z2 = jnp.maximum(z2, 0.0)                            # ReLU
        # dropout2: eval-mode identity.
        logits = jnp.dot(z2.astype(w3_ref.dtype), w3_ref[...],
                         preferred_element_type=jnp.float32) + b3_ref[...]
        # dropout3: eval-mode identity.
        o_ref[...] = logits.astype(o_ref.dtype)


def st_performer_cls_head(x, params, *, s_tile=1024, param_dtype=jnp.bfloat16):
    """x: (B, S, D) float32 backbone output -> logits (B, n_class) float32."""
    cw, cb, w1, b1, w2, b2, w3, b3 = params
    b, s, d = x.shape
    hidden1 = w1.shape[1]      # 512
    hidden2 = w2.shape[1]      # 200
    n_class = w3.shape[1]
    c_pad = _round_up(max(n_class, 128), 128)   # lane-dense output (multiple of 128)

    # --- tiling / padding (static at trace time) ----------------------------
    if b >= 8:
        tb = 8
        bp = _round_up(b, tb)
    else:
        tb = b
        bp = b

    # Budget the S-chunk so double-buffered streaming tiles (x chunk + w1 chunk)
    # stay well under the default scoped-VMEM limit on every chip generation.
    bytes_per_s_row = tb * d * 4 + hidden1 * 2              # x row (f32) + w1 row (bf16)
    budget = 10 * 1024 * 1024                               # ~10 MiB for the 2x buffers
    ts_cap = max(8, (budget // (2 * bytes_per_s_row)) // 8 * 8)
    ts = min(_round_up(s, 8), _round_up(s_tile, 8), ts_cap)
    sp = _round_up(s, ts)

    xp = x
    if (bp, sp) != (b, s):
        xp = jnp.pad(x, ((0, bp - b), (0, sp - s), (0, 0)))
    # Padded W1 rows are zero -> padded S positions contribute nothing to fc1.
    # (conv bias + ReLU on padded rows yields a finite value, but w1 row = 0 kills it.)
    w1p = w1 if sp == s else jnp.pad(w1, ((0, sp - s), (0, 0)))
    w3p = jnp.pad(w3, ((0, 0), (0, c_pad - n_class)))
    b3p = jnp.pad(b3, ((0, c_pad - n_class),))

    # bf16 weights for the MXU (f32 accumulation inside the kernel).
    w1p = w1p.astype(param_dtype)
    w2c = w2.astype(param_dtype)
    w3p = w3p.astype(param_dtype)

    grid = (bp // tb, sp // ts)

    flops = (2 * bp * sp * d          # conv reduce
             + 2 * bp * sp * hidden1  # fc1
             + 2 * bp * hidden1 * hidden2
             + 2 * bp * hidden2 * c_pad)
    bytes_accessed = (xp.size * 4
                      + w1p.size * 2 + w2c.size * 2 + w3p.size * 2
                      + bp * c_pad * 4
                      + (d + 1 + hidden1 + hidden2 + c_pad) * 4)

    out = pl.pallas_call(
        cls_head_kernel,
        out_shape=jax.ShapeDtypeStruct((bp, c_pad), jnp.float32),
        grid_spec=pltpu.PrefetchScalarGridSpec(
            num_scalar_prefetch=0,
            grid=grid,
            in_specs=[
                pl.BlockSpec((tb, ts, d), lambda bi, ki: (bi, ki, 0)),      # x chunk
                pl.BlockSpec((1, 1, d), lambda bi, ki: (0, 0, 0)),          # conv weight
                pl.BlockSpec(memory_space=pltpu.MemorySpace.SMEM),          # conv bias
                pl.BlockSpec((ts, hidden1), lambda bi, ki: (ki, 0)),        # w1 chunk
                pl.BlockSpec((1, hidden1), lambda bi, ki: (0, 0)),          # b1
                pl.BlockSpec((hidden1, hidden2), lambda bi, ki: (0, 0)),    # w2 (resident)
                pl.BlockSpec((1, hidden2), lambda bi, ki: (0, 0)),          # b2
                pl.BlockSpec((hidden2, c_pad), lambda bi, ki: (0, 0)),      # w3 (resident)
                pl.BlockSpec((1, c_pad), lambda bi, ki: (0, 0)),            # b3
            ],
            out_specs=pl.BlockSpec((tb, c_pad), lambda bi, ki: (bi, 0)),
            scratch_shapes=[pltpu.VMEM((tb, hidden1), jnp.float32)],
        ),
        compiler_params=pltpu.CompilerParams(
            dimension_semantics=("parallel", "arbitrary")),
        cost_estimate=pl.CostEstimate(flops=flops, transcendentals=0,
                                      bytes_accessed=bytes_accessed),
    )(xp, cw.reshape(1, 1, d), cb.reshape(1), w1p, b1.reshape(1, hidden1),
      w2c, b2.reshape(1, hidden2), w3p, b3p.reshape(1, c_pad))

    return out[:b, :n_class]


# ----------------------------------------------------------------------------
# Parameter init (deterministic, synthetic — mimics module __init__ shapes)
# ----------------------------------------------------------------------------
def init_st_performer_cls(key, dim, max_seq_len, n_class):
    ks = jax.random.split(key, 6)
    cw = 0.05 * jax.random.normal(ks[0], (dim,), jnp.float32)   # Conv2d(1,1,(1,dim))
    cb = jnp.full((1,), 0.1, jnp.float32)                       # conv bias (scalar)
    w1 = 0.02 * jax.random.normal(ks[1], (max_seq_len, 512), jnp.float32)  # fc1 std=0.02
    b1 = jnp.zeros((512,), jnp.float32)                                    # fc1 bias = 0
    w2 = 0.05 * jax.random.normal(ks[2], (512, 200), jnp.float32)
    b2 = 0.05 * jax.random.normal(ks[3], (200,), jnp.float32)
    w3 = 0.05 * jax.random.normal(ks[4], (200, n_class), jnp.float32)
    b3 = 0.05 * jax.random.normal(ks[5], (n_class,), jnp.float32)
    return (cw, cb, w1, b1, w2, b2, w3, b3)


# ----------------------------------------------------------------------------
# Forward pass (matches StPerformerCLS.forward semantics for the CLS head)
# ----------------------------------------------------------------------------
@jax.jit
def st_performer_cls_forward(x, params):
    """x: st_performer backbone output (B, max_seq_len, dim) -> (logits, attn)."""
    logits = st_performer_cls_head(x, params)
    return logits, None


if __name__ == "__main__":
    # Small, module-consistent shapes: batch=2, max_seq_len=16, dim=32, n_class=5.
    B, MAX_SEQ_LEN, DIM, N_CLASS = 2, 16, 32, 5

    key = jax.random.PRNGKey(0)
    k_x, k_p = jax.random.split(key)
    x = jax.random.normal(k_x, (B, MAX_SEQ_LEN, DIM), jnp.float32)
    params = init_st_performer_cls(k_p, DIM, MAX_SEQ_LEN, N_CLASS)

    logits, attn = st_performer_cls_forward(x, params)
    jax.block_until_ready(logits)

    assert logits.shape == (B, N_CLASS)
    assert logits.dtype == jnp.float32
    assert attn is None

    print("KERNEL_OK")
</pallas_src>

<mosaic_0001>
module attributes {stable_mosaic.version = 11 : i64} {
  func.func @cls_head_kernel(%arg0: i32, %arg1: i32, %arg2: memref<2x16x32xf32, #tpu.memory_space<vmem>>, %arg3: memref<1x1x32xf32, #tpu.memory_space<vmem>>, %arg4: memref<1xf32, #tpu.memory_space<smem>>, %arg5: memref<16x512xbf16, #tpu.memory_space<vmem>>, %arg6: memref<1x512xf32, #tpu.memory_space<vmem>>, %arg7: memref<512x200xbf16, #tpu.memory_space<vmem>>, %arg8: memref<1x200xf32, #tpu.memory_space<vmem>>, %arg9: memref<200x128xbf16, #tpu.memory_space<vmem>>, %arg10: memref<1x128xf32, #tpu.memory_space<vmem>>, %arg11: memref<2x128xf32, #tpu.memory_space<vmem>>, %arg12: memref<2x512xf32, #tpu.memory_space<vmem>>) attributes {dimension_semantics = [#tpu.dimension_semantics<parallel>, #tpu.dimension_semantics<arbitrary>], iteration_bounds = array<i64: 1, 1>, scalar_prefetch = 0 : i64, scratch_operands = 1 : i64, tpu.core_type = #tpu.core_type<tc>, window_params = [{transform_indices = @transform_0, window_bounds = array<i64: 2, 16, 32>}, {pipeline_mode = #tpu.pipeline_mode<synchronous>, transform_indices = @transform_1, window_bounds = array<i64: 1, 1, 32>}, {transform_indices = @transform_2, window_bounds = array<i64: 1>}, {transform_indices = @transform_3, window_bounds = array<i64: 16, 512>}, {pipeline_mode = #tpu.pipeline_mode<synchronous>, transform_indices = @transform_4, window_bounds = array<i64: 1, 512>}, {pipeline_mode = #tpu.pipeline_mode<synchronous>, transform_indices = @transform_5, window_bounds = array<i64: 512, 200>}, {pipeline_mode = #tpu.pipeline_mode<synchronous>, transform_indices = @transform_6, window_bounds = array<i64: 1, 200>}, {pipeline_mode = #tpu.pipeline_mode<synchronous>, transform_indices = @transform_7, window_bounds = array<i64: 200, 128>}, {pipeline_mode = #tpu.pipeline_mode<synchronous>, transform_indices = @transform_8, window_bounds = array<i64: 1, 128>}, {transform_indices = @transform_9, window_bounds = array<i64: 2, 128>}]} {
    %c0_i32 = arith.constant 0 : i32
    %0 = arith.cmpi eq, %arg1, %c0_i32 : i32
    %1 = arith.extui %0 : i1 to i32
    %c0_i32_0 = arith.constant 0 : i32
    %2 = arith.cmpi ne, %1, %c0_i32_0 : i32
    scf.if %2 {
      %cst_17 = arith.constant 0.000000e+00 : f32
      %22 = vector.broadcast %cst_17 : f32 to vector<2x512xf32>
      %c0_18 = arith.constant 0 : index
      %c0_19 = arith.constant 0 : index
      %23 = vector.load %arg12[%c0_18, %c0_19] : memref<2x512xf32, #tpu.memory_space<vmem>>, vector<2x512xf32>
      tpu.vector_store %arg12[%c0_18, %c0_19], %22 {strides = array<i32>} : memref<2x512xf32, #tpu.memory_space<vmem>>, vector<2x512xf32>,
    } else {
    }
    %c0 = arith.constant 0 : index
    %c0_1 = arith.constant 0 : index
    %c0_2 = arith.constant 0 : index
    %3 = vector.load %arg2[%c0, %c0_1, %c0_2] : memref<2x16x32xf32, #tpu.memory_space<vmem>>, vector<2x16x32xf32>
    %c0_3 = arith.constant 0 : index
    %c0_4 = arith.constant 0 : index
    %c0_5 = arith.constant 0 : index
    %4 = vector.load %arg3[%c0_3, %c0_4, %c0_5] : memref<1x1x32xf32, #tpu.memory_space<vmem>>, vector<1x1x32xf32>
    %5 = vector.broadcast %4 : vector<1x1x32xf32> to vector<2x16x32xf32>
    %6 = arith.mulf %3, %5 : vector<2x16x32xf32>
    %cst = arith.constant dense<0.000000e+00> : vector<2x16xf32>
    %7 = vector.multi_reduction <add>, %6, %cst [2] : vector<2x16x32xf32> to vector<2x16xf32>
    %c0_6 = arith.constant 0 : index
    %8 = memref.load %arg4[%c0_6] : memref<1xf32, #tpu.memory_space<smem>>
    %9 = vector.broadcast %8 : f32 to vector<2x16xf32>
    %10 = arith.addf %7, %9 : vector<2x16xf32>
    %cst_7 = arith.constant 0.000000e+00 : f32
    %11 = vector.broadcast %cst_7 : f32 to vector<2x16xf32>
    %12 = arith.maximumf %10, %11 : vector<2x16xf32>
    %c0_8 = arith.constant 0 : index
    %c0_9 = arith.constant 0 : index
    %13 = vector.load %arg12[%c0_8, %c0_9] : memref<2x512xf32, #tpu.memory_space<vmem>>, vector<2x512xf32>
    %14 = arith.truncf %12 : vector<2x16xf32> to vector<2x16xbf16>
    %c0_10 = arith.constant 0 : index
    %c0_11 = arith.constant 0 : index
    %15 = vector.load %arg5[%c0_10, %c0_11] : memref<16x512xbf16, #tpu.memory_space<vmem>>, vector<16x512xbf16>
    %cst_12 = arith.constant dense<0.000000e+00> : vector<2x512xf32>
    %16 = tpu.matmul %14, %15, %cst_12 {dimension_numbers = #tpu.dot_dimension_numbers<[1], [0], [0], [1], [0, 0, 1, 1], [], []>} : vector<2x16xbf16>, vector<16x512xbf16>, vector<2x512xf32> -> vector<2x512xf32>
    %17 = arith.addf %13, %16 : vector<2x512xf32>
    %c0_13 = arith.constant 0 : index
    %c0_14 = arith.constant 0 : index
    %18 = vector.load %arg12[%c0_13, %c0_14] : memref<2x512xf32, #tpu.memory_space<vmem>>, vector<2x512xf32>
    tpu.vector_store %arg12[%c0_13, %c0_14], %17 {strides = array<i32>} : memref<2x512xf32, #tpu.memory_space<vmem>>, vector<2x512xf32>,
    %c0_i32_15 = arith.constant 0 : i32
    %19 = arith.cmpi eq, %arg1, %c0_i32_15 : i32
    %20 = arith.extui %19 : i1 to i32
    %c0_i32_16 = arith.constant 0 : i32
    %21 = arith.cmpi ne, %20, %c0_i32_16 : i32
    scf.if %21 {
      %c0_17 = arith.constant 0 : index
      %c0_18 = arith.constant 0 : index
      %22 = vector.load %arg12[%c0_17, %c0_18] : memref<2x512xf32, #tpu.memory_space<vmem>>, vector<2x512xf32>
      %c0_19 = arith.constant 0 : index
      %c0_20 = arith.constant 0 : index
      %23 = vector.load %arg6[%c0_19, %c0_20] : memref<1x512xf32, #tpu.memory_space<vmem>>, vector<1x512xf32>
      %24 = vector.broadcast %23 : vector<1x512xf32> to vector<2x512xf32>
      %25 = arith.addf %22, %24 : vector<2x512xf32>
      %cst_21 = arith.constant 0.000000e+00 : f32
      %26 = vector.broadcast %cst_21 : f32 to vector<2x512xf32>
      %27 = arith.maximumf %25, %26 : vector<2x512xf32>
      %28 = arith.truncf %27 : vector<2x512xf32> to vector<2x512xbf16>
      %c0_22 = arith.constant 0 : index
      %c0_23 = arith.constant 0 : index
      %29 = vector.load %arg7[%c0_22, %c0_23] : memref<512x200xbf16, #tpu.memory_space<vmem>>, vector<512x200xbf16>
      %cst_24 = arith.constant dense<0.000000e+00> : vector<2x200xf32>
      %30 = tpu.matmul %28, %29, %cst_24 {dimension_numbers = #tpu.dot_dimension_numbers<[1], [0], [0], [1], [0, 0, 1, 1], [], []>} : vector<2x512xbf16>, vector<512x200xbf16>, vector<2x200xf32> -> vector<2x200xf32>
      %c0_25 = arith.constant 0 : index
      %c0_26 = arith.constant 0 : index
      %31 = vector.load %arg8[%c0_25, %c0_26] : memref<1x200xf32, #tpu.memory_space<vmem>>, vector<1x200xf32>
      %32 = vector.broadcast %31 : vector<1x200xf32> to vector<2x200xf32>
      %33 = arith.addf %30, %32 : vector<2x200xf32>
      %cst_27 = arith.constant 0.000000e+00 : f32
      %34 = vector.broadcast %cst_27 : f32 to vector<2x200xf32>
      %35 = arith.maximumf %33, %34 : vector<2x200xf32>
      %36 = arith.truncf %35 : vector<2x200xf32> to vector<2x200xbf16>
      %c0_28 = arith.constant 0 : index
      %c0_29 = arith.constant 0 : index
      %37 = vector.load %arg9[%c0_28, %c0_29] : memref<200x128xbf16, #tpu.memory_space<vmem>>, vector<200x128xbf16>
      %cst_30 = arith.constant dense<0.000000e+00> : vector<2x128xf32>
      %38 = tpu.matmul %36, %37, %cst_30 {dimension_numbers = #tpu.dot_dimension_numbers<[1], [0], [0], [1], [0, 0, 1, 1], [], []>} : vector<2x200xbf16>, vector<200x128xbf16>, vector<2x128xf32> -> vector<2x128xf32>
      %c0_31 = arith.constant 0 : index
      %c0_32 = arith.constant 0 : index
      %39 = vector.load %arg10[%c0_31, %c0_32] : memref<1x128xf32, #tpu.memory_space<vmem>>, vector<1x128xf32>
      %40 = vector.broadcast %39 : vector<1x128xf32> to vector<2x128xf32>
      %41 = arith.addf %38, %40 : vector<2x128xf32>
      %c0_33 = arith.constant 0 : index
      %c0_34 = arith.constant 0 : index
      %42 = vector.load %arg11[%c0_33, %c0_34] : memref<2x128xf32, #tpu.memory_space<vmem>>, vector<2x128xf32>
      tpu.vector_store %arg11[%c0_33, %c0_34], %41 {strides = array<i32>} : memref<2x128xf32, #tpu.memory_space<vmem>>, vector<2x128xf32>,
    } else {
    }
    return
  }
  func.func @transform_0(%arg0: i32, %arg1: i32) -> (i32, i32, i32) {
    %c0_i32 = arith.constant 0 : i32
    %c0_i32_0 = arith.constant 0 : i32
    return %arg0, %arg1, %c0_i32 : i32, i32, i32
  }
  func.func @transform_1(%arg0: i32, %arg1: i32) -> (i32, i32, i32) {
    %c0_i32 = arith.constant 0 : i32
    %c0_i32_0 = arith.constant 0 : i32
    %c0_i32_1 = arith.constant 0 : i32
    %c0_i32_2 = arith.constant 0 : i32
    return %c0_i32, %c0_i32_0, %c0_i32_1 : i32, i32, i32
  }
  func.func @transform_2(%arg0: i32, %arg1: i32) -> i32 {
    %c0_i32 = arith.constant 0 : i32
    %c0_i32_0 = arith.constant 0 : i32
    return %c0_i32 : i32
  }
  func.func @transform_3(%arg0: i32, %arg1: i32) -> (i32, i32) {
    %c0_i32 = arith.constant 0 : i32
    %c0_i32_0 = arith.constant 0 : i32
    return %arg1, %c0_i32 : i32, i32
  }
  func.func @transform_4(%arg0: i32, %arg1: i32) -> (i32, i32) {
    %c0_i32 = arith.constant 0 : i32
    %c0_i32_0 = arith.constant 0 : i32
    %c0_i32_1 = arith.constant 0 : i32
    return %c0_i32, %c0_i32_0 : i32, i32
  }
  func.func @transform_5(%arg0: i32, %arg1: i32) -> (i32, i32) {
    %c0_i32 = arith.constant 0 : i32
    %c0_i32_0 = arith.constant 0 : i32
    %c0_i32_1 = arith.constant 0 : i32
    return %c0_i32, %c0_i32_0 : i32, i32
  }
  func.func @transform_6(%arg0: i32, %arg1: i32) -> (i32, i32) {
    %c0_i32 = arith.constant 0 : i32
    %c0_i32_0 = arith.constant 0 : i32
    %c0_i32_1 = arith.constant 0 : i32
    return %c0_i32, %c0_i32_0 : i32, i32
  }
  func.func @transform_7(%arg0: i32, %arg1: i32) -> (i32, i32) {
    %c0_i32 = arith.constant 0 : i32
    %c0_i32_0 = arith.constant 0 : i32
    %c0_i32_1 = arith.constant 0 : i32
    return %c0_i32, %c0_i32_0 : i32, i32
  }
  func.func @transform_8(%arg0: i32, %arg1: i32) -> (i32, i32) {
    %c0_i32 = arith.constant 0 : i32
    %c0_i32_0 = arith.constant 0 : i32
    %c0_i32_1 = arith.constant 0 : i32
    return %c0_i32, %c0_i32_0 : i32, i32
  }
  func.func @transform_9(%arg0: i32, %arg1: i32) -> (i32, i32) {
    %c0_i32 = arith.constant 0 : i32
    %c0_i32_0 = arith.constant 0 : i32
    return %arg0, %c0_i32 : i32, i32
  }
}

</mosaic_0001>

<bundles_post_ra>
// kernel: st_performer_cls_forward.1
= control target key start
LH: loop header
LB: loop body
LE: loop exit
PB: predicated region body
PF: predicated region fallthrough
CT: control target
= control target key end

     0   :  { %vm55_vm0 = vcmask 261120   ;;  %v1198_v15 = vmov 0   ;;  %s1565_s0 = inlined_call_operand.vmem [shape: f32[2,16,32], index: 0, kind: input, shape index: {}]   ;;  %s1566_s1 = inlined_call_operand.vmem [shape: f32[1,1,32], index: 1, kind: input, shape index: {}]   ;;  %s1567_s2 = inlined_call_operand.<no memory space> [shape: f32[1], index: 2, kind: input, shape index: {}]   ;;  %s1568_s3 = inlined_call_operand.vmem [shape: bf16[16,512], index: 3, kind: input, shape index: {}]   ;;  %s1569_s4 = inlined_call_operand.vmem [shape: f32[1,512], index: 4, kind: input, shape index: {}]   ;;  %s1570_s5 = inlined_call_operand.vmem [shape: bf16[512,200], index: 5, kind: input, shape index: {}]   ;;  %s1571_s6 = inlined_call_operand.vmem [shape: f32[1,200], index: 6, kind: input, shape index: {}]   ;;  %s1572_s7 = inlined_call_operand.vmem [shape: bf16[200,128], index: 7, kind: input, shape index: {}]   ;;  %s1573_s8 = inlined_call_operand.vmem [shape: f32[1,128], index: 8, kind: input, shape index: {}]   ;;  %s1574_s9 = inlined_call_operand.hbm [shape: f32[2,128], index: 9, kind: output, shape index: {}]  }
   0x1   :  { %v42_v0 = vld [vmem:[%s1565_s0 + $0x10] sm:$0xff]  ;;  %v966_v1 = vld [vmem:[%s1566_s1] ss:$0 sm:$0xff]  ;;  %v43_v5 = vld [vmem:[%s1565_s0 + $0x18] sm:$0xff]  ;;  %172 = vmatprep.mubr.bf16.mxu0 %v1198_v15 }
   0x2   :  { %v40_v2 = vld [vmem:[%s1565_s0] sm:$0xff]  ;;  %v53_v3 = vmul.f32 %v966_v1, %v42_v0  ;;  %v41_v6 = vld [vmem:[%s1565_s0 + $0x8] sm:$0xff]  ;;  %v54_v7 = vmul.f32 %v966_v1, %v43_v5 }
   0x3   :  { %v51_v4 = vmul.f32 %v966_v1, %v40_v2  ;;  %v52_v8 = vmul.f32 %v966_v1, %v41_v6  ;;  %v1059_v13 = vld [vmem:[%s1568_s3 + $0x4] ss:$16 sps:$4 sm:$0xff]   ;;  %v1061_v14 = vld [vmem:[%s1568_s3] ss:$16 sps:$4 sm:$0xff]   ;;  %v1064_v16 = vld [vmem:[%s1568_s3 + $0xc] ss:$16 sps:$4 sm:$0xff]  }
   0x4   :  { %v62_v9 = vsel %vm55_vm0, %v53_v3, 0.0  ;;  %v65_v11 = vsel %vm55_vm0, %v54_v7, 0.0  ;;  %140 = vmatprep.subr.bf16.mxu0 %v1059_v13 }
   0x5   :  { %v56_v10 = vsel %vm55_vm0, %v51_v4, 0.0  ;;  %63 = vadd.xlane.f32.xlu1 %v62_v9  ;;  %v59_v12 = vsel %vm55_vm0, %v52_v8, 0.0  ;;  %141 = vmatpush1.bf16.msra.mxu0 %v1061_v14 }
   0x6   :  { %57 = vadd.xlane.f32.xlu0 %v56_v10  ;;  %181 = vmatprep.subr.bf16.mxu0 %v1064_v16 }
   0x9   :  { %66 = vadd.xlane.f32.xlu1 %v65_v11 }
   0xa   :  { %60 = vadd.xlane.f32.xlu0 %v59_v12 }
   0xb   :  { %15 = vsyncpa [#allocation5], 0  ;;  %v1065_v17 = vld [vmem:[%s1570_s5 + $0x4] ss:$8 sps:$4 sm:$0xff]   ;;  %v1067_v18 = vld [vmem:[%s1570_s5] ss:$8 sps:$4 sm:$0xff]   ;;  %v91_v36 = vlaneseq  ;;  %v69_v37 = vstv %s1567_s2 }
   0xc   :  { %v1071_v19 = vld [vmem:[%s1570_s5 + $0x14] ss:$8 sps:$4 sm:$0xff]   ;;  %710 = vmatprep.subr.bf16.mxu1 %v1065_v17  ;;  %v1073_v20 = vld [vmem:[%s1570_s5 + $0x10] ss:$8 sps:$4 sm:$0xff]   ;;  %v1077_v21 = vld [vmem:[%s1570_s5 + $0x24] ss:$8 sps:$4 sm:$0xff]  }
   0xd   :  { %711 = vmatpush1.bf16.msra.mxu1 %v1067_v18  ;;  %v1079_v22 = vld [vmem:[%s1570_s5 + $0x20] ss:$8 sps:$4 sm:$0xff]   ;;  %v1083_v23 = vld [vmem:[%s1570_s5 + $0x34] ss:$8 sps:$4 sm:$0xff]   ;;  %v1085_v24 = vld [vmem:[%s1570_s5 + $0x30] ss:$8 sps:$4 sm:$0xff]  }
   0xe   :  { %712 = vmatprep.subr.bf16.mxu1 %v1071_v19  ;;  %v1089_v25 = vld [vmem:[%s1570_s5 + $0x44] ss:$8 sps:$4 sm:$0xff]   ;;  %v1091_v26 = vld [vmem:[%s1570_s5 + $0x40] ss:$8 sps:$4 sm:$0xff]   ;;  %v1095_v27 = vld [vmem:[%s1570_s5 + $0x54] ss:$8 sps:$4 sm:$0xff]  }
   0xf   :  { %v1097_v28 = vld [vmem:[%s1570_s5 + $0x50] ss:$8 sps:$4 sm:$0xff]   ;;  %v1101_v29 = vld [vmem:[%s1570_s5 + $0x64] ss:$8 sps:$4 sm:$0xff]   ;;  %v1103_v30 = vld [vmem:[%s1570_s5 + $0x60] ss:$8 sps:$4 sm:$0xff]  }
  0x10   :  { %v1107_v31 = vld [vmem:[%s1570_s5 + $0x74] ss:$8 sps:$4 sm:$0xff]   ;;  %v1109_v32 = vld [vmem:[%s1570_s5 + $0x70] ss:$8 sps:$4 sm:$0xff]   ;;  %v1113_v33 = vld [vmem:[%s1570_s5 + $0x84] ss:$8 sps:$4 sm:$0xff]  }
  0x11   :  { %713 = vmatpush1.bf16.msra.mxu1 %v1073_v20  ;;  %v1115_v34 = vld [vmem:[%s1570_s5 + $0x80] ss:$8 sps:$4 sm:$0xff]   ;;  %v1119_v35 = vld [vmem:[%s1570_s5 + $0x94] ss:$8 sps:$4 sm:$0xff]   ;;  %v92_v40 = vand.u32 127, %v91_v36  ;;  %v1336_v45 = vshrl.u32 %v91_v36, 7 }
  0x12   :  { %714 = vmatprep.subr.bf16.mxu1 %v1077_v21  ;;  %vm102_vm1 = vcmask 130112   ;;  %vm113_vm2 = vcmask 1041409   ;;  %v1062_v3 = vld [vmem:[%s1568_s3 + $0x8] ss:$16 sps:$4 sm:$0xff]   ;;  %vm136_vm3 = vcmask 130048   ;;  %vm907_vm4 = vcmask 1043456  }
  0x13   :  { %v97_v46 = vadd.s32 4294967288, %v92_v40  ;;  %v95_v53 = vsub.s32 %v92_v40, %v1336_v45  ;;  %v1070_v6 = vld [vmem:[%s1570_s5 + $0x104] ss:$8 sps:$4 sm:$0xff]   ;;  %v1068_v7 = vld [vmem:[%s1570_s5 + $0x100] ss:$8 sps:$4 sm:$0xff]   ;;  %vm903_vm5 = vcmask 588800  }
  0x14   :  { %v1076_v8 = vld [vmem:[%s1570_s5 + $0x114] ss:$8 sps:$4 sm:$0xff]   ;;  %v1074_v9 = vld [vmem:[%s1570_s5 + $0x110] ss:$8 sps:$4 sm:$0xff]   ;;  %v1082_v10 = vld [vmem:[%s1570_s5 + $0x124] ss:$8 sps:$4 sm:$0xff]  }
  0x15   :  { %715 = vmatpush1.bf16.msra.mxu1 %v1079_v22  ;;  %v100_v54 = vsub.s32 %v97_v46, %v1336_v45  ;;  %v1080_v11 = vld [vmem:[%s1570_s5 + $0x120] ss:$8 sps:$4 sm:$0xff]   ;;  %v1088_v12 = vld [vmem:[%s1570_s5 + $0x134] ss:$8 sps:$4 sm:$0xff]   ;;  %v1086_v13 = vld [vmem:[%s1570_s5 + $0x130] ss:$8 sps:$4 sm:$0xff]  }
  0x16   :  { %716 = vmatprep.subr.bf16.mxu1 %v1083_v23  ;;  %v1094_v14 = vld [vmem:[%s1570_s5 + $0x144] ss:$8 sps:$4 sm:$0xff]   ;;  %v1092_v16 = vld [vmem:[%s1570_s5 + $0x140] ss:$8 sps:$4 sm:$0xff]   ;;  %v1100_v17 = vld [vmem:[%s1570_s5 + $0x154] ss:$8 sps:$4 sm:$0xff]  }
  0x17   :  { %v1098_v18 = vld [vmem:[%s1570_s5 + $0x150] ss:$8 sps:$4 sm:$0xff]   ;;  %v1106_v19 = vld [vmem:[%s1570_s5 + $0x164] ss:$8 sps:$4 sm:$0xff]   ;;  %v1104_v20 = vld [vmem:[%s1570_s5 + $0x160] ss:$8 sps:$4 sm:$0xff]  }
  0x18   :  { %v1112_v21 = vld [vmem:[%s1570_s5 + $0x174] ss:$8 sps:$4 sm:$0xff]   ;;  %v1110_v22 = vld [vmem:[%s1570_s5 + $0x170] ss:$8 sps:$4 sm:$0xff]   ;;  %v1118_v23 = vld [vmem:[%s1570_s5 + $0x184] ss:$8 sps:$4 sm:$0xff]  }
  0x19   :  { %717 = vmatpush1.bf16.msra.mxu1 %v1085_v24  ;;  %v1116_v24 = vld [vmem:[%s1570_s5 + $0x180] ss:$8 sps:$4 sm:$0xff]   ;;  %v1137_v36 = vld [vmem:[%s1570_s5 + $0xc4] ss:$8 sps:$4 sm:$0xff]   ;;  %v1143_v40 = vld [vmem:[%s1570_s5 + $0xd4] ss:$8 sps:$4 sm:$0xff]  }
  0x1a   :  { %718 = vmatprep.subr.bf16.mxu1 %v1089_v25  ;;  %v1121_v25 = vld [vmem:[%s1570_s5 + $0x90] ss:$8 sps:$4 sm:$0xff]   ;;  %v1151_v46 = vld [vmem:[%s1570_s5 + $0xe0] ss:$8 sps:$4 sm:$0xff]  }
  0x1d   :  { %719 = vmatpush1.bf16.msra.mxu1 %v1091_v26  ;;  %v1124_v26 = vld [vmem:[%s1570_s5 + $0x194] ss:$8 sps:$4 sm:$0xff]  }
  0x1e   :  { %720 = vmatprep.subr.bf16.mxu1 %v1095_v27  ;;  %v1122_v27 = vld [vmem:[%s1570_s5 + $0x190] ss:$8 sps:$4 sm:$0xff]  }
  0x21   :  { %721 = vmatpush1.bf16.msra.mxu1 %v1097_v28  ;;  %v1125_v28 = vld [vmem:[%s1570_s5 + $0xa4] ss:$8 sps:$4 sm:$0xff]  }
  0x22   :  { %722 = vmatprep.subr.bf16.mxu1 %v1101_v29  ;;  %v1127_v29 = vld [vmem:[%s1570_s5 + $0xa0] ss:$8 sps:$4 sm:$0xff]  }
  0x25   :  { %723 = vmatpush1.bf16.msra.mxu1 %v1103_v30  ;;  %v1130_v30 = vld [vmem:[%s1570_s5 + $0x1a4] ss:$8 sps:$4 sm:$0xff]  }
  0x26   :  { %724 = vmatprep.subr.bf16.mxu1 %v1107_v31  ;;  %v1128_v31 = vld [vmem:[%s1570_s5 + $0x1a0] ss:$8 sps:$4 sm:$0xff]  }
  0x29   :  { %725 = vmatpush1.bf16.msra.mxu1 %v1109_v32  ;;  %v1131_v32 = vld [vmem:[%s1570_s5 + $0xb4] ss:$8 sps:$4 sm:$0xff]  }
  0x2a   :  { %726 = vmatprep.subr.bf16.mxu1 %v1113_v33  ;;  %v1133_v33 = vld [vmem:[%s1570_s5 + $0xb0] ss:$8 sps:$4 sm:$0xff]  }
  0x2d   :  { %727 = vmatpush1.bf16.msra.mxu1 %v1115_v34  ;;  %v1136_v34 = vld [vmem:[%s1570_s5 + $0x1b4] ss:$8 sps:$4 sm:$0xff]  }
  0x2e   :  { %728 = vmatprep.subr.bf16.mxu1 %v1119_v35  ;;  %v1134_v35 = vld [vmem:[%s1570_s5 + $0x1b0] ss:$8 sps:$4 sm:$0xff]  }
  0x31   :  { %729 = vmatpush1.bf16.msra.mxu1 %v1121_v25 }
  0x32   :  { %730 = vmatprep.subr.bf16.mxu1 %v1125_v28 }
  0x35   :  { %731 = vmatpush1.bf16.msra.mxu1 %v1127_v29  ;;  %v1161_v29 = vld [vmem:[%s1572_s7] sm:$0xff]  }
  0x36   :  { %732 = vmatprep.subr.bf16.mxu1 %v1131_v32 }
  0x39   :  { %733 = vmatpush1.bf16.msra.mxu1 %v1133_v33  ;;  %v1162_v33 = vld [vmem:[%s1572_s7 + $0x8] sm:$0xff]  }
  0x3a   :  { %734 = vmatprep.subr.bf16.mxu1 %v1137_v36  ;;  %v1165_v36 = vld [vmem:[%s1572_s7 + $0x20] sm:$0xff]  }
  0x92   :  { %v64_v38 = vpop.xlane.xlu1 %63 }
  0x93   :  { %v58_v39 = vpop.xlane.xlu0 %57  ;;  %v72_v41 = vadd.f32 %v69_v37, %v64_v38  ;;  %v1142_v38 = vld [vmem:[%s1570_s5 + $0x1c4] ss:$8 sps:$4 sm:$0xff]  }
  0x94   :  { %v70_v42 = vadd.f32 %v69_v37, %v58_v39  ;;  %v1140_v39 = vld [vmem:[%s1570_s5 + $0x1c0] ss:$8 sps:$4 sm:$0xff]  }
  0x95   :  { %v76_v49 = vmax.f32 %v72_v41, 0.0  ;;  %v1145_v41 = vld [vmem:[%s1570_s5 + $0xd0] ss:$8 sps:$4 sm:$0xff]  }
  0x96   :  { %v67_v43 = vpop.xlane.xlu1 %66  ;;  %v74_v50 = vmax.f32 %v70_v42, 0.0  ;;  %v1146_v42 = vld [vmem:[%s1570_s5 + $0x1d0] ss:$8 sps:$4 sm:$0xff]  }
  0x97   :  { %v61_v44 = vpop.xlane.xlu0 %60  ;;  %v73_v47 = vadd.f32 %v69_v37, %v67_v43  ;;  %v1148_v43 = vld [vmem:[%s1570_s5 + $0x1d4] ss:$8 sps:$4 sm:$0xff]  }
  0x98   :  { %v71_v48 = vadd.f32 %v69_v37, %v61_v44  ;;  %v1139_v37 = vld [vmem:[%s1570_s5 + $0xc0] ss:$8 sps:$4 sm:$0xff]   ;;  %v1149_v44 = vld [vmem:[%s1570_s5 + $0xe4] ss:$8 sps:$4 sm:$0xff]  }
  0x99   :  { %v77_v51 = vmax.f32 %v73_v47, 0.0  ;;  %735 = vmatpush1.bf16.msra.mxu1 %v1139_v37  ;;  %v1154_v47 = vld [vmem:[%s1570_s5 + $0x1e4] ss:$8 sps:$4 sm:$0xff]  }
  0x9a   :  { %v75_v52 = vmax.f32 %v71_v48, 0.0  ;;  %736 = vmatprep.subr.bf16.mxu1 %v1143_v40  ;;  %v1155_v48 = vld [vmem:[%s1570_s5 + $0xf4] ss:$8 sps:$4 sm:$0xff]   ;;  %v1166_v37 = vld [vmem:[%s1572_s7 + $0x28] sm:$0xff]   ;;  %v1169_v40 = vld [vmem:[%s1572_s7 + $0x40] sm:$0xff]  }
  0x9b   :  { %v80_v55 = vpack.c.bf16 %v77_v51, %v76_v49  ;;  %v1152_v49 = vld [vmem:[%s1570_s5 + $0x1e0] ss:$8 sps:$4 sm:$0xff]   ;;  %v1157_v51 = vld [vmem:[%s1570_s5 + $0xf0] ss:$8 sps:$4 sm:$0xff]  }
  0x9c   :  { %v79_v56 = vpack.c.bf16 %v75_v52, %v74_v50  ;;  %v1160_v50 = vld [vmem:[%s1570_s5 + $0x1f4] ss:$8 sps:$4 sm:$0xff]   ;;  %v1158_v52 = vld [vmem:[%s1570_s5 + $0x1f0] ss:$8 sps:$4 sm:$0xff]   ;;  %s1200_s5 = smov [#allocation4]  }
  0x9d   :  { %v89_v57 = vunpack.c.l.b16 %v80_v55  ;;  %v90_v58 = vunpack.c.h.b16 %v80_v55  ;;  %737 = vmatpush1.bf16.msra.mxu1 %v1145_v41  ;;  %v262_v55 = vsub.s32 2, %v1336_v45  ;;  %v1170_v41 = vld [vmem:[%s1572_s7 + $0x48] sm:$0xff]   ;;  %s958_s13 = sshll.u32 %s1200_s5, 4  ;;  %s959_s13 = int_to_ptr.vmem [resolvable:$true] %s958_s13 }
  0x9e   :  { %v87_v59 = vunpack.c.l.b16 %v79_v56  ;;  %v88_v60 = vunpack.c.h.b16 %v79_v56  ;;  %738 = vmatprep.subr.bf16.mxu1 %v1149_v44  ;;  %v266_v56 = vsub.s32 3, %v1336_v45  ;;  %v1173_v44 = vld [vmem:[%s1572_s7 + $0x60] ss:$0 sps:$4 sm:$0xff]   ;;  %s1174_s14 = scalar_lea.vmem %s959_s13, 32  ;;  %p1179_p1 = scmp.lt.s32.totalorder %s959_s13, %s959_s13 }
  0x9f   :  { %v107_v61 = vrot.slane %v89_v57, %v95_v53  ;;  %v111_v62 = vrot.slane %v90_v58, %v100_v54  ;;  %v250_v57 = vld [vmem:[%s1569_s4] sm:$0xf]  ;;  %v1199_v58 = vmov 1983009808   ;;  %p1175_p0 = scmp.ne.s32.totalorder %s959_s13, %s1174_s14  ;;  %p1180_p2 = scmp.lt.s32.totalorder %s1174_s14, %s1174_s14 }
  0xa0   :  { %v96_v63 = vrot.slane %v87_v59, %v95_v53  ;;  %v101_v0 = vrot.slane %v88_v60, %v100_v54  ;;  %v254_v53 = vsub.s32 0, %v1336_v45  ;;  %v258_v54 = vsub.s32 1, %v1336_v45 }
  0xa1   :  { %v112_v2 = vsel %vm102_vm1, %v111_v62, %v107_v61  ;;  %739 = vmatpush1.bf16.msra.mxu1 %v1151_v46  ;;  %v229_v59 = vunpack.c.l.s4 %v1199_v58  ;;  %v909_v46 = vsel %vm907_vm4, %v1173_v44, 0  ;;  %p1181_p3 = por %p1180_p2, %p1179_p1 }
  0xa2   :  { %v103_v1 = vsel %vm102_vm1, %v101_v0, %v96_v63  ;;  %740 = vmatprep.subr.bf16.mxu1 %v1155_v48  ;;  %v255_v61 = vrot.slane %v250_v57, %v254_v53  ;;  %v259_v62 = vrot.slane %v250_v57, %v258_v54  ;;  %v263_v63 = vrot.slane %v250_v57, %v262_v55 }
  0xa3   :  { %v114_v4 = vsel %vm113_vm2, %v112_v2, %v103_v1  ;;  %v267_v0 = vrot.slane %v250_v57, %v266_v56  ;;  %p1182_p4 = pnand %p1181_p3, %p1175_p0 }
  0xa4   :  { %v115_v5 = vpack.c.b16 %v114_v4, %v114_v4 }
  0xa5   :  { %741 = vmatpush1.bf16.msra.mxu1 %v1157_v51 }
  0xa6   :  { %971 = vmatmul.mubr.msk.bf16.vlgmr.msra.gmra.mrb[0].mxu0 %vm136_vm3, %v115_v5  ;;  %911 = vmatprep.subr.bf16.mxu1 %v1198_v15 }
  0xa7   :  { %182 = vmatpush1.bf16.msra.mxu0 %v1062_v3  ;;  %213 = vmatprep.mubr.bf16.mxu0 %v1198_v15  ;;  %v230_v3 = vunpack.c.0.s8 %v229_v59 }
  0xa8   :  { %751 = vmatprep.subr.bf16.mxu0 %v1070_v6  ;;  %v268_v6 = vcombine.low %v255_v61, %v259_v62 }
  0xae   :  { %972 = vmatmul.mubr.msk.bf16.vlgmr.msra.gmra.mrb[4].mxu0 %vm136_vm3, %v115_v5 }
  0xaf   :  { %752 = vmatpush1.bf16.msra.mxu0 %v1068_v7  ;;  %v269_v7 = vcombine.low %v263_v63, %v267_v0 }
  0xb0   :  { %753 = vmatprep.subr.bf16.mxu0 %v1076_v8  ;;  %v233_v8 = vsub.s32 %v230_v3, %v1336_v45  ;;  %v1037_v45 = vld [vmem:[%s1573_s8] ss:$0 sm:$0xff] }
  0xb3   :  { %754 = vmatpush1.bf16.msra.mxu0 %v1074_v9 }
  0xb4   :  { %755 = vmatprep.subr.bf16.mxu0 %v1082_v10  ;;  %v276_v10 = vrot.slane %v268_v6, %v233_v8 }
  0xb7   :  { %756 = vmatpush1.bf16.msra.mxu0 %v1080_v11  ;;  %v283_v11 = vrot.slane %v269_v7, %v233_v8 }
  0xb8   :  { %757 = vmatprep.subr.bf16.mxu0 %v1088_v12 }
  0xbb   :  { %758 = vmatpush1.bf16.msra.mxu0 %v1086_v13 }
  0xbc   :  { %759 = vmatprep.subr.bf16.mxu0 %v1094_v14 }
  0xbf   :  { %760 = vmatpush1.bf16.msra.mxu0 %v1092_v16 }
  0xc0   :  { %761 = vmatprep.subr.bf16.mxu0 %v1100_v17 }
  0xc3   :  { %762 = vmatpush1.bf16.msra.mxu0 %v1098_v18 }
  0xc4   :  { %763 = vmatprep.subr.bf16.mxu0 %v1106_v19  ;;  %v284_v19 = vcombine.low %v276_v10, %v283_v11 }
  0xc7   :  { %764 = vmatpush1.bf16.msra.mxu0 %v1104_v20 }
  0xc8   :  { %765 = vmatprep.subr.bf16.mxu0 %v1112_v21 }
  0xcb   :  { %766 = vmatpush1.bf16.msra.mxu0 %v1110_v22 }
  0xcc   :  { %767 = vmatprep.subr.bf16.mxu0 %v1118_v23 }
  0xcf   :  { %768 = vmatpush1.bf16.msra.mxu0 %v1116_v24 }
  0xd0   :  { %769 = vmatprep.subr.bf16.mxu0 %v1124_v26 }
  0xd3   :  { %770 = vmatpush1.bf16.msra.mxu0 %v1122_v27 }
  0xd4   :  { %771 = vmatprep.subr.bf16.mxu0 %v1130_v30 }
  0xd7   :  { %772 = vmatpush1.bf16.msra.mxu0 %v1128_v31 }
  0xd8   :  { %773 = vmatprep.subr.bf16.mxu0 %v1136_v34  ;;  %v1163_v34 = vld [vmem:[%s1572_s7 + $0x10] sm:$0xff]  }
  0xdb   :  { %774 = vmatpush1.bf16.msra.mxu0 %v1134_v35  ;;  %v1164_v35 = vld [vmem:[%s1572_s7 + $0x18] sm:$0xff]  }
  0xdc   :  { %775 = vmatprep.subr.bf16.mxu0 %v1142_v38  ;;  %v1167_v38 = vld [vmem:[%s1572_s7 + $0x30] sm:$0xff]  }
  0xdf   :  { %776 = vmatpush1.bf16.msra.mxu0 %v1140_v39  ;;  %v1168_v39 = vld [vmem:[%s1572_s7 + $0x38] sm:$0xff]  }
  0xe0   :  { %777 = vmatprep.subr.bf16.mxu0 %v1148_v43  ;;  %v1172_v43 = vld [vmem:[%s1572_s7 + $0x58] sm:$0xff]  }
  0xe3   :  { %778 = vmatpush1.bf16.msra.mxu0 %v1146_v42  ;;  %v1171_v42 = vld [vmem:[%s1572_s7 + $0x50] sm:$0xff]  }
  0xe4   :  { %779 = vmatprep.subr.bf16.mxu0 %v1154_v47  ;;  %v378_v47 = vld [vmem:[%s1571_s6] sm:$0x3] }
  0xe5   :  { %v383_v48 = vrot.slane %v378_v47, %v254_v53 }
  0xe7   :  { %780 = vmatpush1.bf16.msra.mxu0 %v1152_v49  ;;  %v387_v49 = vrot.slane %v378_v47, %v258_v54 }
  0xe8   :  { %781 = vmatprep.subr.bf16.mxu0 %v1160_v50 }
  0xeb   :  { %782 = vmatpush1.bf16.msra.mxu0 %v1158_v52 }
 0x179   :  { %v174_v60 = vpop.f32.mrb[0].mxu0 }
 0x17a   :  { %v176_v1 = vpop.f32.mrb[1].mxu0 }
 0x17b   :  { %v226_v2 = vcombine.low %v174_v60, %v176_v1  ;;  %v178_v4 = vpop.f32.mrb[2].mxu0 }
 0x17c   :  { %v179_v5 = vpop.f32.mrb[3].mxu0 }
 0x17d   :  { %v234_v17 = vrot.slane %v226_v2, %v233_v8 }
 0x181   :  { %v215_v9 = vpop.f32.mrb[4].mxu0 }
 0x182   :  { %v217_v12 = vpop.f32.mrb[5].mxu0 }
 0x183   :  { %v227_v13 = vcombine.low %v215_v9, %v217_v12  ;;  %v219_v14 = vpop.f32.mrb[6].mxu0 }
 0x184   :  { %v220_v16 = vpop.f32.mrb[7].mxu0 }
 0x185   :  { %v241_v18 = vrot.slane %v227_v13, %v233_v8 }
 0x187   :  { %v242_v20 = vcombine.low %v234_v17, %v241_v18 }
 0x189   :  { %v286_v21 = vadd.f32 %v284_v19, %v242_v20 }
 0x18b   :  { %v287_v22 = vmax.f32 %v286_v21, 0.0 }
 0x18d   :  { %v289_v23 = vcombine.high %v287_v22, %v287_v22  ;;  %v296_v24 = vrot.slane %v287_v22, %v233_v8 }
 0x18f   :  { %v304_v25 = vcombine.high %v296_v24, %v296_v24  ;;  %v303_v26 = vrot.slane %v289_v23, %v233_v8  ;;  %v310_v30 = vpack.c.bf16 %v296_v24, %v296_v24 }
 0x191   :  { %v311_v27 = vpack.c.bf16 %v304_v25, %v304_v25  ;;  %v305_v28 = vcombine.high %v303_v26, %v303_v26  ;;  %v312_v32 = vpack.c.bf16 %v303_v26, %v303_v26 }
 0x193   :  { %742 = vmatprep.mubr.bf16.mxu1 %v311_v27  ;;  %v313_v31 = vpack.c.bf16 %v305_v28, %v305_v28 }
 0x194   :  { %743 = vmatmul.mubr.bf16.vlgmr.msra.gmra.mrb[0].mxu1 %v310_v30 }
 0x195   :  { %783 = vmatprep.mubr.bf16.mxu0 %v313_v31  ;;  %912 = vmatpush1.bf16.msra.mxu1 %v1161_v29 }
 0x196   :  { %784 = vmatmul.mubr.bf16.vlgmr.msra.gmra.mrb[8].mxu0 %v312_v32  ;;  %913 = vmatprep.subr.bf16.mxu1 %v1198_v15 }
 0x199   :  { %914 = vmatpush1.bf16.msra.mxu1 %v1162_v33 }
 0x19a   :  { %915 = vmatprep.subr.bf16.mxu1 %v1198_v15 }
 0x19d   :  { %916 = vmatpush1.bf16.msra.mxu1 %v1163_v34 }
 0x19e   :  { %917 = vmatprep.subr.bf16.mxu1 %v1198_v15 }
 0x1a1   :  { %918 = vmatpush1.bf16.msra.mxu1 %v1164_v35 }
 0x1a2   :  { %919 = vmatprep.subr.bf16.mxu1 %v1198_v15 }
 0x1a5   :  { %920 = vmatpush1.bf16.msra.mxu1 %v1165_v36 }
 0x1a6   :  { %921 = vmatprep.subr.bf16.mxu1 %v1198_v15 }
 0x1a9   :  { %922 = vmatpush1.bf16.msra.mxu1 %v1166_v37 }
 0x1aa   :  { %923 = vmatprep.subr.bf16.mxu1 %v1198_v15 }
 0x1ad   :  { %924 = vmatpush1.bf16.msra.mxu1 %v1167_v38 }
 0x1ae   :  { %925 = vmatprep.subr.bf16.mxu1 %v1198_v15 }
 0x1b1   :  { %926 = vmatpush1.bf16.msra.mxu1 %v1168_v39 }
 0x1b2   :  { %927 = vmatprep.subr.bf16.mxu1 %v1198_v15 }
 0x1b5   :  { %928 = vmatpush1.bf16.msra.mxu1 %v1169_v40 }
 0x1b6   :  { %929 = vmatprep.subr.bf16.mxu1 %v1198_v15 }
 0x1b9   :  { %930 = vmatpush1.bf16.msra.mxu1 %v1170_v41 }
 0x1ba   :  { %931 = vmatprep.subr.bf16.mxu1 %v1198_v15 }
 0x1bd   :  { %932 = vmatpush1.bf16.msra.mxu1 %v1171_v42 }
 0x1be   :  { %933 = vmatprep.subr.bf16.mxu1 %v1198_v15 }
 0x1c1   :  { %934 = vmatpush1.bf16.msra.mxu1 %v1172_v43 }
 0x1c2   :  { %935 = vmatprep.subr.bf16.mxu1 %v1198_v15 }
 0x1c5   :  { %936 = vmatpush1.bf16.msra.mxu1 %v909_v46 }
 0x267   :  { %v744_v50 = vpop.f32.mrb[0].mxu1 }
 0x268   :  { %v745_v51 = vadd.f32 %v744_v50, %v383_v48  ;;  %v746_v15 = vpop.f32.mrb[1].mxu1 }
 0x269   :  { %v747_v52 = vadd.f32 %v746_v15, %v387_v49  ;;  %v748_v55 = vpop.f32.mrb[2].mxu1  ;;  %v785_v56 = vpop.f32.mrb[8].mxu0 }
 0x26a   :  { %v786_v57 = vadd.f32 %v785_v56, %v745_v51  ;;  %v749_v58 = vpop.f32.mrb[3].mxu1  ;;  %v787_v59 = vpop.f32.mrb[9].mxu0 }
 0x26b   :  { %v788_v60 = vadd.f32 %v787_v59, %v747_v52  ;;  %v789_v61 = vpop.f32.mrb[10].mxu0 }
 0x26c   :  { %v792_v62 = vmax.f32 %v786_v57, 0.0  ;;  %v790_v63 = vpop.f32.mrb[11].mxu0 }
 0x26d   :  { %v793_v0 = vmax.f32 %v788_v60, 0.0 }
 0x26e   :  { %v794_v53 = vpack.c.bf16 %v792_v62, %v792_v62 }
 0x26f   :  { %v795_v1 = vpack.c.bf16 %v793_v0, %v793_v0 }
 0x271   :  { %1051 = vmatprep.mubr.msk.bf16.mxu1 %vm903_vm5, %v795_v1 }
 0x272   :  { %944 = vmatmul.mubr.bf16.vlgmr.msra.gmra.mrb[4].mxu1 %v794_v53 }
 0x345   :  { %v945_v54 = vpop.f32.mrb[4].mxu1 }
 0x346   :  { %v946_v2 = vadd.f32 %v1037_v45, %v945_v54  ;;  %v947_v3 = vpop.f32.mrb[5].mxu1 }
 0x347   :  { %v948_v4 = vpop.f32.mrb[6].mxu1 }
 0x348   :  { %951 = vst [vmem:[#allocation4] sm:$0x3] %v946_v2  ;;  %v949_v5 = vpop.f32.mrb[7].mxu1 }
 0x349   :  { %1185 = shalt.err (!%p1182_p4)
}
 0x34a   :  { %s1186_s8 = scalar_lea.hbm %s1574_s9, 32 }
 0x34b   :  { %p1187_p5 = scmp.ne.s32.totalorder %s1574_s9, %s1186_s8  ;;  %p1190_p6 = scmp.lt.u32.totalorder %s1186_s8, %s1574_s9 }
 0x34d   :  { %p1192_p7 = pnand %p1190_p6, %p1187_p5 }
 0x34f   :  { %1195 = shalt.err (!%p1192_p7)
}
 0x350   :  { %961 = dma.vmem_to_hbm [thread:$0]  %s959_s13, 32, %s1574_s9, [#allocation5]  }
 0x351   :  { %1196 = dma.done.wait [#allocation5], 32  }
 0x352   :  { %1197 = vsyncadd [#allocation5], 4294967264 }
 0x353   :  { %965 = vsyncpa [#allocation5], 1 }

</bundles_post_ra>
